<compile_context>
chip_gen: v5e
topology: v5e:2x2
jax: 0.10.0
libtpu: 0.0.40
codegen_flags: <defaults>
</compile_context>

<pallas_src>
import functools
import math

import jax
import jax.numpy as jnp
from jax import lax
from jax.experimental import pallas as pl
from jax.experimental.pallas import tpu as pltpu

N_HEAD = 4  # config.n_head


# ---------------------------------------------------------------------------
# Tile pickers: keep blocks (8, 128)-legal without padding.
# ---------------------------------------------------------------------------
def _pick_row_tile(n, target):
    """Largest multiple of 8 that divides n and is <= target (else n)."""
    if n <= target:
        return n
    t = (target // 8) * 8
    while t >= 8:
        if n % t == 0:
            return t
        t -= 8
    return n


def _pick_lane_tile(n, target):
    """Largest multiple of 128 that divides n and is <= target (else n)."""
    if n <= target:
        return n
    t = (target // 128) * 128
    while t >= 128:
        if n % t == 0:
            return t
        t -= 128
    return n


# ---------------------------------------------------------------------------
# Kernel 1: fused QKV projection.
#   x (M, C)  @  wqkv (3, C, C)  + bqkv (3, 1, C)  ->  qkv (3, M, C)
# Grid axes: (row tile i, qkv index j, contraction tile k).
# ---------------------------------------------------------------------------
def _qkv_kernel(x_ref, w_ref, b_ref, o_ref, acc_ref):
    @pl.when(pl.program_id(2) == 0)
    def _():
        acc_ref[...] = jnp.zeros_like(acc_ref)

    # Cast the x tile to the compute dtype inside the kernel (no XLA cast pass).
    acc_ref[...] += jnp.dot(x_ref[...].astype(w_ref.dtype), w_ref[0],
                            preferred_element_type=jnp.float32)

    @pl.when(pl.program_id(2) == pl.num_programs(2) - 1)
    def _():
        o_ref[0] = (acc_ref[...] + b_ref[0]).astype(o_ref.dtype)


def _qkv_projection(x2d, wqkv, bqkv, *, out_dtype):
    M, K = x2d.shape
    three, Kw, N = wqkv.shape
    assert three == 3 and K == Kw
    tm = _pick_row_tile(M, 512)
    tk = _pick_lane_tile(K, 512)
    # NOTE: the per-j output width N == C stays un-tiled; for very large C
    # (>~4096 in bf16) add an N grid axis or raise vmem_limit_bytes.
    return pl.pallas_call(
        _qkv_kernel,
        out_shape=jax.ShapeDtypeStruct((3, M, N), out_dtype),
        grid=(M // tm, 3, K // tk),
        in_specs=[
            pl.BlockSpec((tm, tk), lambda i, j, k: (i, k)),
            pl.BlockSpec((1, tk, N), lambda i, j, k: (j, k, 0)),
            pl.BlockSpec((1, 1, N), lambda i, j, k: (j, 0, 0)),
        ],
        out_specs=pl.BlockSpec((1, tm, N), lambda i, j, k: (j, i, 0)),
        scratch_shapes=[pltpu.VMEM((tm, N), jnp.float32)],
        compiler_params=pltpu.CompilerParams(
            dimension_semantics=("parallel", "parallel", "arbitrary")),
    )(x2d, wqkv, bqkv)


# ---------------------------------------------------------------------------
# Kernel 2: generic M/N/K-tiled linear  y = x @ W + b  (W already (in, out)).
# ---------------------------------------------------------------------------
def _linear_kernel(x_ref, w_ref, b_ref, o_ref, acc_ref):
    @pl.when(pl.program_id(2) == 0)
    def _():
        acc_ref[...] = jnp.zeros_like(acc_ref)

    acc_ref[...] += jnp.dot(x_ref[...].astype(w_ref.dtype), w_ref[...],
                            preferred_element_type=jnp.float32)

    @pl.when(pl.program_id(2) == pl.num_programs(2) - 1)
    def _():
        o_ref[...] = (acc_ref[...] + b_ref[...]).astype(o_ref.dtype)


def _linear(x2d, w, b, *, out_dtype):
    M, K = x2d.shape
    Kw, N = w.shape
    assert K == Kw
    tm = _pick_row_tile(M, 512)
    tn = _pick_lane_tile(N, 512)
    tk = _pick_lane_tile(K, 512)
    return pl.pallas_call(
        _linear_kernel,
        out_shape=jax.ShapeDtypeStruct((M, N), out_dtype),
        grid=(M // tm, N // tn, K // tk),
        in_specs=[
            pl.BlockSpec((tm, tk), lambda i, j, k: (i, k)),
            pl.BlockSpec((tk, tn), lambda i, j, k: (k, j)),
            pl.BlockSpec((1, tn), lambda i, j, k: (0, j)),
        ],
        out_specs=pl.BlockSpec((tm, tn), lambda i, j, k: (i, j)),
        scratch_shapes=[pltpu.VMEM((tm, tn), jnp.float32)],
        compiler_params=pltpu.CompilerParams(
            dimension_semantics=("parallel", "parallel", "arbitrary")),
    )(x2d, w, b)


# ---------------------------------------------------------------------------
# Kernel 3: flash attention, all heads per grid step, online softmax.
# Reads q/k/v straight out of the (3, B, T, C) qkv buffer; writes (B, T, C).
# ---------------------------------------------------------------------------
def _flash_kernel(q_ref, k_ref, v_ref, o_ref, m_sc, l_sc, acc_sc, *,
                  n_head, head_dim, approx_recip):
    ki = pl.program_id(2)

    @pl.when(ki == 0)
    def _():
        m_sc[...] = jnp.full(m_sc.shape, -jnp.inf, dtype=m_sc.dtype)
        l_sc[...] = jnp.zeros(l_sc.shape, dtype=l_sc.dtype)
        acc_sc[...] = jnp.zeros(acc_sc.shape, dtype=acc_sc.dtype)

    q = q_ref[0, 0]   # (tq, C)  -- Q columns already pre-scaled by 1/sqrt(hd)
    k = k_ref[0, 0]   # (tkv, C)
    v = v_ref[0, 0]   # (tkv, C)

    # Per-head online softmax over static hd-wide column slices (static unroll).
    for h in range(n_head):
        cs = slice(h * head_dim, (h + 1) * head_dim)
        # "NT" contraction over the head dim -- no in-kernel transpose.
        s = lax.dot_general(q[:, cs], k[:, cs], (((1,), (1,)), ((), ())),
                            preferred_element_type=jnp.float32)       # (tq, tkv)

        # NOTE: module's mask buffer is all-ones -> no causal masking applied.
        m_prev = m_sc[:, h:h + 1]                                      # (tq, 1)
        m_new = jnp.maximum(m_prev, jnp.max(s, axis=-1, keepdims=True))
        alpha = jnp.exp(m_prev - m_new)
        p = jnp.exp(s - m_new)                                         # f32
        l_sc[:, h:h + 1] = (alpha * l_sc[:, h:h + 1] +
                            jnp.sum(p, axis=-1, keepdims=True))
        acc_sc[:, cs] = alpha * acc_sc[:, cs] + jnp.dot(
            p.astype(v.dtype), v[:, cs], preferred_element_type=jnp.float32)
        m_sc[:, h:h + 1] = m_new

    @pl.when(ki == pl.num_programs(2) - 1)
    def _():
        for h in range(n_head):
            cs = slice(h * head_dim, (h + 1) * head_dim)
            inv = pl.reciprocal(l_sc[:, h:h + 1], approx=approx_recip)
            o_ref[0, :, cs] = (acc_sc[:, cs] * inv).astype(o_ref.dtype)


def _flash_attention(qkv, *, n_head, out_dtype, approx_recip):
    three, B, T, C = qkv.shape
    assert three == 3
    hd = C // n_head
    tq = _pick_row_tile(T, 256)
    tkv = _pick_row_tile(T, 512)

    kernel = functools.partial(_flash_kernel, n_head=n_head, head_dim=hd,
                               approx_recip=approx_recip)
    return pl.pallas_call(
        kernel,
        out_shape=jax.ShapeDtypeStruct((B, T, C), out_dtype),
        grid=(B, T // tq, T // tkv),
        in_specs=[
            pl.BlockSpec((1, 1, tq, C), lambda b, qi, ki: (0, b, qi, 0)),
            pl.BlockSpec((1, 1, tkv, C), lambda b, qi, ki: (1, b, ki, 0)),
            pl.BlockSpec((1, 1, tkv, C), lambda b, qi, ki: (2, b, ki, 0)),
        ],
        out_specs=pl.BlockSpec((1, tq, C), lambda b, qi, ki: (b, qi, 0)),
        scratch_shapes=[
            pltpu.VMEM((tq, n_head), jnp.float32),   # running max (per head)
            pltpu.VMEM((tq, n_head), jnp.float32),   # running sum (per head)
            pltpu.VMEM((tq, C), jnp.float32),        # output accumulator
        ],
        compiler_params=pltpu.CompilerParams(
            dimension_semantics=("parallel", "parallel", "arbitrary")),
    )(qkv, qkv, qkv)


# ---------------------------------------------------------------------------
# Full forward pass
# ---------------------------------------------------------------------------
def causal_self_attention(x, params, *, compute_dtype=jnp.bfloat16):
    """x: (B, T, C). params: (wq, bq, wk, bk, wv, bv, wp, bp) in PyTorch layout
    (weights are (out_features, in_features), biases (out_features,))."""
    wq, bq, wk, bk, wv, bv, wp, bp = params
    B, T, C = x.shape
    H = N_HEAD
    hd = C // H
    scale = 1.0 / math.sqrt(hd)
    f32 = jnp.float32

    # One-time weight prep (outside the kernels):
    #  * pre-transpose to (in, out) so kernels do plain x @ W,
    #  * stack q/k/v on a leading axis -> (3, C, C) fused weight,
    #  * fold the 1/sqrt(hd) attention scale into the Q weights/bias.
    wqkv = jnp.stack([wq.T * scale, wk.T, wv.T], axis=0).astype(compute_dtype)   # (3, C, C)
    bqkv = jnp.stack([jnp.reshape(bq, (1, C)) * scale,
                      jnp.reshape(bk, (1, C)),
                      jnp.reshape(bv, (1, C))], axis=0).astype(f32)              # (3, 1, C)
    wp_t = wp.T.astype(compute_dtype)                                            # (C, C)
    bp2 = jnp.reshape(bp, (1, C)).astype(f32)                                    # (1, C)

    # Fused QKV projection over all B*T rows (x cast in-kernel, no XLA cast pass).
    x2d = x.reshape(B * T, C)
    qkv = _qkv_projection(x2d, wqkv, bqkv, out_dtype=compute_dtype)              # (3, B*T, C)
    qkv = qkv.reshape(3, B, T, C)                                                # free reshape

    # Flash attention, all heads per grid step, no head split/merge relayouts.
    # (Module's mask buffer is all-ones -> no causal masking.)
    y = _flash_attention(qkv, n_head=H, out_dtype=compute_dtype,
                         approx_recip=bool(compute_dtype != jnp.float32))        # (B, T, C)

    # Output projection over all B*T rows (free reshape, no transposes).
    out = _linear(y.reshape(B * T, C), wp_t, bp2, out_dtype=x.dtype)             # (B*T, C)

    # TODO(synk): attn_drop / resid_drop (training-mode dropout) not implemented;
    # eval-mode semantics (dropout = identity) are reproduced.
    return out.reshape(B, T, C)


# ---------------------------------------------------------------------------
# Plain-JAX reference mirroring the PyTorch forward (eval mode)
# ---------------------------------------------------------------------------
def _reference(x, params):
    wq, bq, wk, bk, wv, bv, wp, bp = params
    B, T, C = x.shape
    hd = C // N_HEAD

    def lin(z, w, b):
        return z @ w.T + b.reshape(1, -1)

    q = lin(x, wq, bq).reshape(B, T, N_HEAD, hd).transpose(0, 2, 1, 3)
    k = lin(x, wk, bk).reshape(B, T, N_HEAD, hd).transpose(0, 2, 1, 3)
    v = lin(x, wv, bv).reshape(B, T, N_HEAD, hd).transpose(0, 2, 1, 3)
    att = jnp.einsum('bhqd,bhkd->bhqk', q, k) * (1.0 / math.sqrt(hd))
    att = jax.nn.softmax(att, axis=-1)   # all-ones mask buffer -> no masking
    y = jnp.einsum('bhqk,bhkd->bhqd', att, v)
    y = y.transpose(0, 2, 1, 3).reshape(B, T, C)
    return lin(y, wp, bp)


if __name__ == "__main__":
    # Small config consistent with the module: n_emb=32, n_head=4, block_size>=T.
    B, T, C = 2, 8, 32

    key = jax.random.PRNGKey(0)
    ks = jax.random.split(key, 9)
    sc = 1.0 / math.sqrt(C)

    wq = jax.random.normal(ks[0], (C, C), jnp.float32) * sc
    wk = jax.random.normal(ks[1], (C, C), jnp.float32) * sc
    wv = jax.random.normal(ks[2], (C, C), jnp.float32) * sc
    wp = jax.random.normal(ks[3], (C, C), jnp.float32) * sc
    bq = jax.random.normal(ks[4], (C,), jnp.float32) * sc
    bk = jax.random.normal(ks[5], (C,), jnp.float32) * sc
    bv = jax.random.normal(ks[6], (C,), jnp.float32) * sc
    bp = jax.random.normal(ks[7], (C,), jnp.float32) * sc
    params = (wq, bq, wk, bk, wv, bv, wp, bp)

    x = jax.random.normal(ks[8], (B, T, C), jnp.float32)

    ref = _reference(x, params)

    # f32 compute path: exact reciprocal, tighter check.
    out_f32 = jax.block_until_ready(
        causal_self_attention(x, params, compute_dtype=jnp.float32))
    assert out_f32.shape == (B, T, C)
    assert jnp.allclose(out_f32, ref, atol=1e-2, rtol=1e-2), "f32 kernel mismatch"

    # bf16 compute path (default; MXU-friendly on v6e/v7x): loose check.
    out_bf16 = jax.block_until_ready(causal_self_attention(x, params))
    assert out_bf16.shape == (B, T, C)
    assert jnp.allclose(out_bf16, ref, atol=1e-1, rtol=1e-1), "bf16 kernel mismatch"

    print("KERNEL_OK")
</pallas_src>

<mosaic_0001>
module attributes {stable_mosaic.version = 11 : i64} {
  func.func @_qkv_kernel(%arg0: i32, %arg1: i32, %arg2: i32, %arg3: memref<16x32xf32, #tpu.memory_space<vmem>>, %arg4: memref<1x32x32xf32, #tpu.memory_space<vmem>>, %arg5: memref<1x1x32xf32, #tpu.memory_space<vmem>>, %arg6: memref<1x16x32xf32, #tpu.memory_space<vmem>>, %arg7: memref<16x32xf32, #tpu.memory_space<vmem>>) attributes {dimension_semantics = [#tpu.dimension_semantics<parallel>, #tpu.dimension_semantics<parallel>, #tpu.dimension_semantics<arbitrary>], iteration_bounds = array<i64: 1, 3, 1>, scalar_prefetch = 0 : i64, scratch_operands = 1 : i64, tpu.core_type = #tpu.core_type<tc>, window_params = [{transform_indices = @transform_0, window_bounds = array<i64: 16, 32>}, {transform_indices = @transform_1, window_bounds = array<i64: 1, 32, 32>}, {transform_indices = @transform_2, window_bounds = array<i64: 1, 1, 32>}, {transform_indices = @transform_3, window_bounds = array<i64: 1, 16, 32>}]} {
    %c0_i32 = arith.constant 0 : i32
    %0 = arith.cmpi eq, %arg2, %c0_i32 : i32
    %1 = arith.extui %0 : i1 to i32
    %c0_i32_0 = arith.constant 0 : i32
    %2 = arith.cmpi ne, %1, %c0_i32_0 : i32
    scf.if %2 {
      %cst_11 = arith.constant 0.000000e+00 : f32
      %13 = vector.broadcast %cst_11 : f32 to vector<16x32xf32>
      %c0_12 = arith.constant 0 : index
      %c0_13 = arith.constant 0 : index
      %14 = vector.load %arg7[%c0_12, %c0_13] : memref<16x32xf32, #tpu.memory_space<vmem>>, vector<16x32xf32>
      tpu.vector_store %arg7[%c0_12, %c0_13], %13 {strides = array<i32>} : memref<16x32xf32, #tpu.memory_space<vmem>>, vector<16x32xf32>,
    } else {
    }
    %c0 = arith.constant 0 : index
    %c0_1 = arith.constant 0 : index
    %3 = vector.load %arg7[%c0, %c0_1] : memref<16x32xf32, #tpu.memory_space<vmem>>, vector<16x32xf32>
    %c0_2 = arith.constant 0 : index
    %c0_3 = arith.constant 0 : index
    %4 = vector.load %arg3[%c0_2, %c0_3] : memref<16x32xf32, #tpu.memory_space<vmem>>, vector<16x32xf32>
    %c0_4 = arith.constant 0 : index
    %c0_5 = arith.constant 0 : index
    %c0_6 = arith.constant 0 : index
    %5 = vector.load %arg4[%c0_4, %c0_5, %c0_6] : memref<1x32x32xf32, #tpu.memory_space<vmem>>, vector<1x32x32xf32>
    %6 = vector.shape_cast %5 : vector<1x32x32xf32> to vector<32x32xf32>
    %cst = arith.constant dense<0.000000e+00> : vector<16x32xf32>
    %7 = tpu.matmul %4, %6, %cst {dimension_numbers = #tpu.dot_dimension_numbers<[1], [0], [0], [1], [0, 0, 1, 1], [], []>} : vector<16x32xf32>, vector<32x32xf32>, vector<16x32xf32> -> vector<16x32xf32>
    %8 = arith.addf %3, %7 : vector<16x32xf32>
    %c0_7 = arith.constant 0 : index
    %c0_8 = arith.constant 0 : index
    %9 = vector.load %arg7[%c0_7, %c0_8] : memref<16x32xf32, #tpu.memory_space<vmem>>, vector<16x32xf32>
    tpu.vector_store %arg7[%c0_7, %c0_8], %8 {strides = array<i32>} : memref<16x32xf32, #tpu.memory_space<vmem>>, vector<16x32xf32>,
    %c0_i32_9 = arith.constant 0 : i32
    %10 = arith.cmpi eq, %arg2, %c0_i32_9 : i32
    %11 = arith.extui %10 : i1 to i32
    %c0_i32_10 = arith.constant 0 : i32
    %12 = arith.cmpi ne, %11, %c0_i32_10 : i32
    scf.if %12 {
      %c0_11 = arith.constant 0 : index
      %c0_12 = arith.constant 0 : index
      %13 = vector.load %arg7[%c0_11, %c0_12] : memref<16x32xf32, #tpu.memory_space<vmem>>, vector<16x32xf32>
      %c0_13 = arith.constant 0 : index
      %c0_14 = arith.constant 0 : index
      %c0_15 = arith.constant 0 : index
      %14 = vector.load %arg5[%c0_13, %c0_14, %c0_15] : memref<1x1x32xf32, #tpu.memory_space<vmem>>, vector<1x1x32xf32>
      %15 = vector.shape_cast %14 : vector<1x1x32xf32> to vector<1x32xf32>
      %16 = vector.broadcast %15 : vector<1x32xf32> to vector<16x32xf32>
      %17 = arith.addf %13, %16 : vector<16x32xf32>
      %c0_16 = arith.constant 0 : index
      %c0_17 = arith.constant 0 : index
      %c0_18 = arith.constant 0 : index
      %18 = vector.load %arg6[%c0_16, %c0_17, %c0_18] : memref<1x16x32xf32, #tpu.memory_space<vmem>>, vector<1x16x32xf32>
      %19 = vector.shape_cast %18 : vector<1x16x32xf32> to vector<16x32xf32>
      %20 = vector.shape_cast %17 : vector<16x32xf32> to vector<1x16x32xf32>
      tpu.vector_store %arg6[%c0_16, %c0_17, %c0_18], %20 {strides = array<i32>} : memref<1x16x32xf32, #tpu.memory_space<vmem>>, vector<1x16x32xf32>,
    } else {
    }
    return
  }
  func.func @transform_0(%arg0: i32, %arg1: i32, %arg2: i32) -> (i32, i32) {
    %c0_i32 = arith.constant 0 : i32
    return %arg0, %arg2 : i32, i32
  }
  func.func @transform_1(%arg0: i32, %arg1: i32, %arg2: i32) -> (i32, i32, i32) {
    %c0_i32 = arith.constant 0 : i32
    %c0_i32_0 = arith.constant 0 : i32
    return %arg1, %arg2, %c0_i32 : i32, i32, i32
  }
  func.func @transform_2(%arg0: i32, %arg1: i32, %arg2: i32) -> (i32, i32, i32) {
    %c0_i32 = arith.constant 0 : i32
    %c0_i32_0 = arith.constant 0 : i32
    %c0_i32_1 = arith.constant 0 : i32
    return %arg1, %c0_i32, %c0_i32_0 : i32, i32, i32
  }
  func.func @transform_3(%arg0: i32, %arg1: i32, %arg2: i32) -> (i32, i32, i32) {
    %c0_i32 = arith.constant 0 : i32
    %c0_i32_0 = arith.constant 0 : i32
    return %arg1, %arg0, %c0_i32 : i32, i32, i32
  }
}

</mosaic_0001>

<bundles_post_ra>
// kernel: tpu_custom_call.1
= control target key start
LH: loop header
LB: loop body
LE: loop exit
PB: predicated region body
PF: predicated region fallthrough
CT: control target
= control target key end

     0   :  { %8 = vsyncpa [#allocation4], 0  ;;  %s978_s0 = inlined_call_operand.hbm [shape: f32[16,32], index: 0, kind: input, shape index: {}]   ;;  %s979_s1 = inlined_call_operand.hbm [shape: f32[3,32,32], index: 1, kind: input, shape index: {}]   ;;  %s980_s2 = inlined_call_operand.hbm [shape: f32[3,1,32], index: 2, kind: input, shape index: {}]   ;;  %s981_s3 = inlined_call_operand.hbm [shape: f32[3,16,32], index: 3, kind: output, shape index: {}]  }
   0x1   :  { %9 = vsyncpa [#allocation7], 0 }
   0x2   :  { %11 = vsyncpa [#allocation7 + $0x1], 0 }
   0x3   :  { %12 = vsyncpa [#allocation5], 0 }
   0x4   :  { %14 = vsyncpa [#allocation5 + $0x1], 0  ;;  %s794_s12 = smov 0   ;;  %s796_s13 = smov 0  }
   0x5   :  { %s798_s14 = smov 0   ;;  %s800_s15 = smov 0  }
   0x6   :  { %s802_s16 = smov 0   ;;  %s804_s17 = smov 0  }
   0x7 LB: > { %s35_s18 = sadd.s32 1, %s762_s16  ;;  %s76_s19 = sadd.s32 1, %s754_s14  ;;  %s766_s17 = sphi %s804_s17, %s20_s17   ;;  %s762_s16 = sphi %s802_s16, %s992_s16   ;;  %s758_s15 = sphi %s800_s15, %s991_s15   ;;  %s754_s14 = sphi %s798_s14, %s990_s14   ;;  %s750_s13 = sphi %s796_s13, %s989_s13   ;;  %s746_s12 = sphi %s794_s12, %s988_s12  }
   0x8   : > { %p37_p0 = scmp.ge.s32.totalorder %s35_s18, 3  ;;  %p83_p1 = scmp.ne.s32.totalorder %s754_s14, %s750_s13 }
   0x9   : > { %p84_p2 = scmp.eq.s32.totalorder %s766_s17, 0  ;;  %p532_p5 = scmp.lt.s32.totalorder %s766_s17, 3 }
   0xa   : > { %s994_s18 = smov (%p37_p0, %s35_s18), 0  ;;  %s185_s22 = sand.u32 1, %s766_s17  }
   0xb   : > { %p834_p3 = por %p84_p2, %p83_p1  ;;  %s71_s21 = ssub.s32 %s762_s16, %s994_s18 }
   0xc   : > { %p74_p4 = scmp.eq.s32.totalorder %s71_s21, 0  ;;  %s187_s23 = sand.u32 1, %s754_s14  }
   0xd   : > { %s486_s25 = sshll.u32 %s187_s23, 5  ;;  %s500_s26 = sshll.u32 %s762_s16, 5 }
   0xe   : > { %s844_s24 = scalar_select %p74_p4, %s754_s14, %s76_s19  }
   0xf   : > { %s196_s29 = scalar_lea.hbm %s979_s1, %s500_s26  ;;  %s189_s30 = scalar_lea.vmem [#allocation6], %s486_s25 }
  0x10   : > { %s199_s4 = sshll.u32 %s189_s30, 4  ;;  %s197_s5 = sshll.u32 %s196_s29, 4  ;;  %s200_s4 = int_to_ptr.vmem [resolvable:$true] %s199_s4  ;;  %s198_s5 = int_to_ptr.hbm [resolvable:$true] %s197_s5 }
  0x11   : > { %p854_p6 = pnand %p532_p5, %p834_p3  ;;  %s858_s7 = scalar_lea.sflag [#allocation7], %s185_s22 }
  0x12   : > { %s768_s8 = smov 128   ;;  %s769_s9 = smov 8  }
  0x13   : > { %523 = dma.hbm_to_vmem [thread:$0]  (!%p854_p6), %s198_s5, 512, %s200_s4, %s858_s7, %s768_s8, %s768_s8, %s769_s9  }
  0x14   : > { %s867_s10 = sadd.s32 4294967295, %s766_s17   ;;  %s482_s11 = sadd.s32 4294967294, %s766_s17  }
  0x15   : > { %p89_p7 = scmp.ne.s32.totalorder %s750_s13, %s746_s12  ;;  %p90_p8 = scmp.eq.s32.totalorder %s867_s10, 0 }
  0x16   : > { %p141_p9 = scmp.eq.s32.totalorder %s867_s10, 2  ;;  %p147_p10 = scmp.eq.s32.totalorder %s482_s11, 2 }
  0x17   : > { %p483_p11 = scmp.ge.s32.totalorder %s766_s17, 1  ;;  %p877_p12 = por %p90_p8, %p89_p7 }
  0x18   : > { %p884_p13 = por %p141_p9, %p83_p1  ;;  %p888_p0 = por %p147_p10, %p89_p7 }
  0x19   : > { %p154_p2 = scmp.lt.s32.totalorder %s766_s17, 4  ;;  %s169_s26 = sshll.u32 %s978_s0, 4  ;;  %s170_s26 = int_to_ptr.hbm [resolvable:$true] %s169_s26 }
  0x1a   : > { %s770_s28 = smov [#allocation3]   ;;  %s215_s5 = scalar_lea.hbm %s980_s2, %s762_s16 }
  0x1b   : > { %p896_p3 = pnand %p483_p11, %p154_p2  ;;  %s171_s29 = sshll.u32 %s770_s28, 4  ;;  %s172_s29 = int_to_ptr.vmem [resolvable:$true] %s171_s29 }
  0x1c   : > { %s217_s11 = sshll.u32 %s215_s5, 4  ;;  %s212_s22 = scalar_lea.vmem [#allocation8], %s187_s23  ;;  %s218_s11 = int_to_ptr.hbm [resolvable:$true] %s217_s11 }
  0x1d   : > { %p516_p1 = pneg %p896_p3  ;;  %s219_s25 = sshll.u32 %s212_s22, 4  ;;  %s220_s25 = int_to_ptr.vmem [resolvable:$true] %s219_s25 }
  0x1e   : > { %526 = dma.hbm_to_vmem [thread:$0]  (!%p854_p6), %s218_s11, 16, %s220_s25, %s858_s7  }
  0x1f   : > { %p517_p4 = pnand %p516_p1, %p90_p8  ;;  %228 = sbr.rel (%p896_p3) target bundleno = 192 (0xc0), region = 32 }
  0x21   : > { %519 = dma.hbm_to_vmem [thread:$0]  (!%p517_p4), %s170_s26, 256, %s172_s29, [#allocation4], %s768_s8, %s768_s8, %s769_s9  }
  0x24   : > { %733 = dma.done.wait (%p90_p8), [#allocation4], 256  }
  0x25   : > { %735 = vsyncadd (%p90_p8), [#allocation4], 4294967040  ;;  %s235_s23 = sand.u32 1, %s867_s10   ;;  %s924_s28 = sand.u32 1, %s750_s13  }
  0x26   : > { %s491_s30 = sshll.u32 %s924_s28, 5  ;;  %s236_s8 = scalar_lea.sflag [#allocation7], %s235_s23 }
  0x27   : > { %s239_s6 = scalar_lea.vmem [#allocation6], %s491_s30 }
  0x28   : > { %737 = dma.done.wait (%p877_p12), %s236_s8, 528  }
  0x29   : > { %739 = vsyncadd (%p877_p12), %s236_s8, 4294966768  ;;  %vm283_vm0 = vcmask 261120   ;;  %v771_v0 = vmov 0.0   ;;  %v293_v1 = vld [vmem:[%s239_s6 + $0x18] sm:$0xff]  ;;  %v292_v2 = vld [vmem:[%s239_s6 + $0x10] sm:$0xff]  ;;  %s248_s7 = scalar_lea.vmem [#allocation8], %s924_s28 }
  0x2a   : > { %284 = vst.msk [vmem:[#allocation2] sm:$0xff] %vm283_vm0, %v771_v0  ;;  %313 = vmatpush.msra.mxu0 %v293_v1  ;;  %502 = vmatpush.msra.mxu1 %v293_v1  ;;  %v291_v3 = vld [vmem:[%s239_s6 + $0x8] sm:$0xff]  ;;  %v290_v4 = vld [vmem:[%s239_s6] sm:$0xff]  ;;  %v288_v5 = vld [vmem:[#allocation3] sm:$0xff]  ;;  %s492_s9 = sshll.u32 %s924_s28, 4  ;;  %s501_s10 = sshll.u32 %s758_s15, 4 }
  0x2b   : > { %285 = vst.msk [vmem:[#allocation2 + $0x8] sm:$0xff] %vm283_vm0, %v771_v0  ;;  %v289_v6 = vld [vmem:[#allocation3 + $0x8] sm:$0xff]  ;;  %s355_s27 = scalar_lea.hbm %s981_s3, %s501_s10  ;;  %v589_v13 = vld [vmem:[%s248_s7] ss:$0 sm:$0xff]  ;;  %s275_s29 = scalar_lea.vmem [#allocation9], %s492_s9 }
  0x2c   : > { %314 = vmatpush.msra.mxu0 %v292_v2  ;;  %503 = vmatpush.msra.mxu1 %v292_v2  ;;  %s356_s4 = sshll.u32 %s275_s29, 4  ;;  %s358_s5 = sshll.u32 %s355_s27, 4  ;;  %s357_s4 = int_to_ptr.vmem [resolvable:$true] %s356_s4  ;;  %s359_s5 = int_to_ptr.hbm [resolvable:$true] %s358_s5 }
  0x2d   : > { %s342_s15 = scalar_lea.sflag [#allocation5], %s924_s28  ;;  %s694_s11 = sshra.s32 %s359_s5, 4  ;;  %s695_s11 = int_to_ptr.hbm [resolvable:$true] %s694_s11 }
  0x2e   : > { %315 = vmatpush.msra.mxu0 %v291_v3  ;;  %504 = vmatpush.msra.mxu1 %v291_v3  ;;  %s696_s22 = scalar_lea.hbm %s695_s11, 16  ;;  %s700_s30 = scalar_lea.hbm %s981_s3, 48 }
  0x2f   : > { %p697_p5 = scmp.ne.s32.totalorder %s695_s11, %s696_s22  ;;  %p701_p8 = scmp.lt.s32.totalorder %s695_s11, %s981_s3 }
  0x30   : > { %316 = vmatpush.msra.mxu0 %v290_v4  ;;  %505 = vmatpush.msra.mxu1 %v290_v4  ;;  %p702_p9 = scmp.lt.s32.totalorder %s700_s30, %s696_s22 }
  0x31   : > { %493 = vmatmul.msk.f32.vlgmr.msra.gmra.mxu0 %vm283_vm0, %v288_v5  ;;  %494 = vmatmul.msk.f32.vlgmr.msra.gmra.mxu1 %vm283_vm0, %v289_v6  ;;  %v286_v7 = vld [vmem:[#allocation2] sm:$0xff]  ;;  %p698_p6 = pnand %p697_p5, %p884_p13 }
  0x32   : > { %v287_v8 = vld [vmem:[#allocation2 + $0x8] sm:$0xff]  ;;  %p703_p10 = por %p702_p9, %p701_p8 }
  0x33   : > { %p699_p7 = pneg %p698_p6 }
  0x35   : > { %p704_p11 = pnand %p703_p10, %p699_p7 }
  0xae   : > { %v318_v9 = vpop.f32.mrf.mxu0  ;;  %v321_v10 = vpop.f32.mrf.mxu1 }
  0xaf   : > { %v324_v11 = vadd.f32 %v318_v9, %v286_v7  ;;  %v325_v12 = vadd.f32 %v321_v10, %v287_v8 }
  0xb1   : > { %326 = vst.msk [vmem:[#allocation2] sm:$0xff] %vm283_vm0, %v324_v11 }
  0xb2   : > { %327 = vst.msk [vmem:[#allocation2 + $0x8] sm:$0xff] %vm283_vm0, %v325_v12 }
  0xb8   : > { %v331_v14 = vld [vmem:[#allocation2] sm:$0xff] }
  0xb9   : > { %v332_v15 = vld [vmem:[#allocation2 + $0x8] sm:$0xff]  ;;  %v337_v16 = vadd.f32 %v589_v13, %v331_v14 }
  0xba   : > { %v338_v17 = vadd.f32 %v589_v13, %v332_v15 }
  0xbb   : > { %339 = vst.msk [vmem:[%s275_s29] sm:$0xff] %vm283_vm0, %v337_v16 }
  0xbc   : > { %340 = vst.msk [vmem:[%s275_s29 + $0x8] sm:$0xff] %vm283_vm0, %v338_v17 }
  0xbd   : > { %707 = shalt.err (!%p704_p11)
}
  0xbe   : > { %s772_s28 = smov 128   ;;  %s773_s7 = smov 8  }
  0xbf   : > { %514 = dma.vmem_to_hbm [thread:$0]  (%p884_p13), %s357_s4, 256, %s359_s5, %s342_s15, %s772_s28, %s772_s28, %s773_s7  }
  0xc0 PF: > { %p534_p12 = scmp.ge.s32.totalorder %s766_s17, 2  ;;  %s373_s9 = sand.u32 1, %s746_s12  }
  0xc1   : > { %s374_s10 = scalar_lea.sflag [#allocation5], %s373_s9 }
  0xc2   : > { %p528_p2 = pnand %p534_p12, %p888_p0 }
  0xc4   : > { %p529_p3 = pneg %p528_p2 }
  0xc6   : > { %741 = dma.done.wait (%p529_p3), %s374_s10, 256  }
  0xc7   : > { %743 = vsyncadd (%p529_p3), %s374_s10, 4294967040  ;;  %s20_s17 = sadd.s32 1, %s766_s17   ;;  %s988_s12 = smov %s750_s13 }
  0xc8   : > { %p17_p1 = scmp.ge.s32.totalorder %s20_s17, 5   ;;  %s989_s13 = smov %s754_s14 }
  0xc9   : > { %s990_s14 = smov %s844_s24  ;;  %s991_s15 = smov %s762_s16 }
  0xca   : > { %s992_s16 = smov %s994_s18  ;;  %19 = sbr.rel (!%p17_p1) target bundleno = 7 (0x7), region = 102 }
  0xcf   :  { %380 = vsyncpa [#allocation4], 1 }
  0xd0   :  { %382 = vsyncpa [#allocation4 + $0x1], 1 }
  0xd1   :  { %383 = vsyncpa [#allocation7], 1 }
  0xd2   :  { %385 = vsyncpa [#allocation7 + $0x1], 1 }
  0xd3   :  { %386 = vsyncpa [#allocation5], 1 }
  0xd4   :  { %388 = vsyncpa [#allocation5 + $0x1], 1 }

</bundles_post_ra>
